<compile_context>
chip_gen: v5e
topology: v5e:2x2
jax: 0.10.0
libtpu: 0.0.40
codegen_flags: <defaults>
</compile_context>

<pallas_src>
import jax
import jax.numpy as jnp
from jax.experimental import pallas as pl
from jax.experimental.pallas import tpu as pltpu

LANE = 128     # lane width: last dims padded to multiples of this
SUBLANE = 8    # sublane width: batch tiles are multiples of this


def _round_up(n, m):
    return ((n + m - 1) // m) * m


def mlp_kernel(x_ref, w1_ref, b1_ref, w2_ref, b2_ref, w3_ref, b3_ref, o_ref):
    # One batch tile per grid step; weights/biases are grid-invariant and stay
    # resident in VMEM. Three fused MXU matmuls with f32 accumulation.
    x = x_ref[...]
    h1 = jnp.dot(x, w1_ref[...], preferred_element_type=jnp.float32) + b1_ref[...]
    h2 = jnp.dot(h1, w2_ref[...], preferred_element_type=jnp.float32) + b2_ref[...]
    out = jnp.dot(h2, w3_ref[...], preferred_element_type=jnp.float32) + b3_ref[...]
    o_ref[...] = out.astype(o_ref.dtype)


def multi_classifier_forward(x, params, *, batch_tile=512):
    """x: (B, input_features) float32. params: pre-transposed (in, out) weights."""
    w1, b1 = params["w1"], params["b1"]
    w2, b2 = params["w2"], params["b2"]
    w3, b3 = params["w3"], params["b3"]

    B, F = x.shape
    H1 = w1.shape[1]
    H2 = w2.shape[1]
    O = w3.shape[1]

    # Lane-aligned (128) feature dims; sublane-aligned (8) batch tile.
    Fp = _round_up(F, LANE)
    Hp1 = _round_up(H1, LANE)
    Hp2 = _round_up(H2, LANE)
    Op = _round_up(O, LANE)

    TB = min(_round_up(B, SUBLANE), batch_tile)   # rows per grid step
    Bp = _round_up(B, TB)                         # padded batch

    # Zero padding (exact for this MLP, see header comment).
    xp = jnp.pad(x, ((0, Bp - B), (0, Fp - F)))
    w1p = jnp.pad(w1, ((0, Fp - F), (0, Hp1 - H1)))
    b1p = jnp.pad(b1, ((0, 0), (0, Hp1 - H1)))
    w2p = jnp.pad(w2, ((0, Hp1 - H1), (0, Hp2 - H2)))
    b2p = jnp.pad(b2, ((0, 0), (0, Hp2 - H2)))
    w3p = jnp.pad(w3, ((0, Hp2 - H2), (0, Op - O)))
    b3p = jnp.pad(b3, ((0, 0), (0, Op - O)))

    grid = (Bp // TB,)

    flops = 2 * Bp * (Fp * Hp1 + Hp1 * Hp2 + Hp2 * Op)
    bytes_accessed = 4 * (xp.size + w1p.size + b1p.size + w2p.size + b2p.size
                          + w3p.size + b3p.size + Bp * Op)

    # Weights/biases: constant index map -> VMEM-resident across the batch grid.
    resident = lambda shape: pl.BlockSpec(shape, lambda i, _s=shape: (0,) * len(_s))

    out_p = pl.pallas_call(
        mlp_kernel,
        out_shape=jax.ShapeDtypeStruct((Bp, Op), x.dtype),
        grid=grid,
        in_specs=[
            pl.BlockSpec((TB, Fp), lambda i: (i, 0)),   # x: tiled over batch
            resident(w1p.shape), resident(b1p.shape),
            resident(w2p.shape), resident(b2p.shape),
            resident(w3p.shape), resident(b3p.shape),
        ],
        out_specs=pl.BlockSpec((TB, Op), lambda i: (i, 0)),
        compiler_params=pltpu.CompilerParams(
            dimension_semantics=("parallel",)),
        cost_estimate=pl.CostEstimate(
            flops=flops, transcendentals=0, bytes_accessed=bytes_accessed),
    )(xp, w1p, b1p, w2p, b2p, w3p, b3p)

    return out_p[:B, :O]


def init_params(key, input_features, output_features, hidden_units):
    """Deterministic init matching nn.Linear's U(-1/sqrt(fan_in), 1/sqrt(fan_in)).
    Weights are stored transposed: (in, out). Kept in f32 (bf16 weights would
    halve DMA bytes on v6e but loosens the 1e-5 check)."""
    def linear(k, fan_in, fan_out):
        kw, kb = jax.random.split(k)
        bound = 1.0 / jnp.sqrt(float(fan_in))
        w = jax.random.uniform(kw, (fan_in, fan_out), jnp.float32, -bound, bound)
        b = jax.random.uniform(kb, (1, fan_out), jnp.float32, -bound, bound)
        return w, b

    k1, k2, k3 = jax.random.split(key, 3)
    w1, b1 = linear(k1, input_features, hidden_units)
    w2, b2 = linear(k2, hidden_units, hidden_units)
    w3, b3 = linear(k3, hidden_units, output_features)
    return {"w1": w1, "b1": b1, "w2": w2, "b2": b2, "w3": w3, "b3": b3}


if __name__ == "__main__":
    key = jax.random.PRNGKey(0)
    k_params, k_x = jax.random.split(key)

    input_features = 8
    output_features = 4
    hidden_units = 32
    batch = 2

    params = init_params(k_params, input_features, output_features, hidden_units)
    x = jax.random.normal(k_x, (batch, input_features), jnp.float32)

    out = multi_classifier_forward(x, params)
    out = jax.block_until_ready(out)

    # Cross-check against a plain-JAX reference of the same math.
    ref = ((x @ params["w1"] + params["b1"]) @ params["w2"] + params["b2"]) \
          @ params["w3"] + params["b3"]
    assert out.shape == (batch, output_features)
    assert jnp.allclose(out, ref, atol=1e-5, rtol=1e-5)

    print("KERNEL_OK")
</pallas_src>

<mosaic_0001>
module attributes {stable_mosaic.version = 11 : i64} {
  func.func @mlp_kernel(%arg0: i32, %arg1: memref<8x128xf32, #tpu.memory_space<vmem>>, %arg2: memref<128x128xf32, #tpu.memory_space<vmem>>, %arg3: memref<1x128xf32, #tpu.memory_space<vmem>>, %arg4: memref<128x128xf32, #tpu.memory_space<vmem>>, %arg5: memref<1x128xf32, #tpu.memory_space<vmem>>, %arg6: memref<128x128xf32, #tpu.memory_space<vmem>>, %arg7: memref<1x128xf32, #tpu.memory_space<vmem>>, %arg8: memref<8x128xf32, #tpu.memory_space<vmem>>) attributes {dimension_semantics = [#tpu.dimension_semantics<parallel>], iteration_bounds = array<i64: 1>, scalar_prefetch = 0 : i64, scratch_operands = 0 : i64, tpu.core_type = #tpu.core_type<tc>, window_params = [{transform_indices = @transform_0, window_bounds = array<i64: 8, 128>}, {pipeline_mode = #tpu.pipeline_mode<synchronous>, transform_indices = @transform_1, window_bounds = array<i64: 128, 128>}, {pipeline_mode = #tpu.pipeline_mode<synchronous>, transform_indices = @transform_2, window_bounds = array<i64: 1, 128>}, {pipeline_mode = #tpu.pipeline_mode<synchronous>, transform_indices = @transform_3, window_bounds = array<i64: 128, 128>}, {pipeline_mode = #tpu.pipeline_mode<synchronous>, transform_indices = @transform_4, window_bounds = array<i64: 1, 128>}, {pipeline_mode = #tpu.pipeline_mode<synchronous>, transform_indices = @transform_5, window_bounds = array<i64: 128, 128>}, {pipeline_mode = #tpu.pipeline_mode<synchronous>, transform_indices = @transform_6, window_bounds = array<i64: 1, 128>}, {transform_indices = @transform_7, window_bounds = array<i64: 8, 128>}]} {
    %c0 = arith.constant 0 : index
    %c0_0 = arith.constant 0 : index
    %0 = vector.load %arg1[%c0, %c0_0] : memref<8x128xf32, #tpu.memory_space<vmem>>, vector<8x128xf32>
    %c0_1 = arith.constant 0 : index
    %c0_2 = arith.constant 0 : index
    %1 = vector.load %arg2[%c0_1, %c0_2] : memref<128x128xf32, #tpu.memory_space<vmem>>, vector<128x128xf32>
    %cst = arith.constant dense<0.000000e+00> : vector<8x128xf32>
    %2 = tpu.matmul %0, %1, %cst {dimension_numbers = #tpu.dot_dimension_numbers<[1], [0], [0], [1], [0, 0, 1, 1], [], []>} : vector<8x128xf32>, vector<128x128xf32>, vector<8x128xf32> -> vector<8x128xf32>
    %c0_3 = arith.constant 0 : index
    %c0_4 = arith.constant 0 : index
    %3 = vector.load %arg3[%c0_3, %c0_4] : memref<1x128xf32, #tpu.memory_space<vmem>>, vector<1x128xf32>
    %4 = vector.broadcast %3 : vector<1x128xf32> to vector<8x128xf32>
    %5 = arith.addf %2, %4 : vector<8x128xf32>
    %c0_5 = arith.constant 0 : index
    %c0_6 = arith.constant 0 : index
    %6 = vector.load %arg4[%c0_5, %c0_6] : memref<128x128xf32, #tpu.memory_space<vmem>>, vector<128x128xf32>
    %cst_7 = arith.constant dense<0.000000e+00> : vector<8x128xf32>
    %7 = tpu.matmul %5, %6, %cst_7 {dimension_numbers = #tpu.dot_dimension_numbers<[1], [0], [0], [1], [0, 0, 1, 1], [], []>} : vector<8x128xf32>, vector<128x128xf32>, vector<8x128xf32> -> vector<8x128xf32>
    %c0_8 = arith.constant 0 : index
    %c0_9 = arith.constant 0 : index
    %8 = vector.load %arg5[%c0_8, %c0_9] : memref<1x128xf32, #tpu.memory_space<vmem>>, vector<1x128xf32>
    %9 = vector.broadcast %8 : vector<1x128xf32> to vector<8x128xf32>
    %10 = arith.addf %7, %9 : vector<8x128xf32>
    %c0_10 = arith.constant 0 : index
    %c0_11 = arith.constant 0 : index
    %11 = vector.load %arg6[%c0_10, %c0_11] : memref<128x128xf32, #tpu.memory_space<vmem>>, vector<128x128xf32>
    %cst_12 = arith.constant dense<0.000000e+00> : vector<8x128xf32>
    %12 = tpu.matmul %10, %11, %cst_12 {dimension_numbers = #tpu.dot_dimension_numbers<[1], [0], [0], [1], [0, 0, 1, 1], [], []>} : vector<8x128xf32>, vector<128x128xf32>, vector<8x128xf32> -> vector<8x128xf32>
    %c0_13 = arith.constant 0 : index
    %c0_14 = arith.constant 0 : index
    %13 = vector.load %arg7[%c0_13, %c0_14] : memref<1x128xf32, #tpu.memory_space<vmem>>, vector<1x128xf32>
    %14 = vector.broadcast %13 : vector<1x128xf32> to vector<8x128xf32>
    %15 = arith.addf %12, %14 : vector<8x128xf32>
    %c0_15 = arith.constant 0 : index
    %c0_16 = arith.constant 0 : index
    %16 = vector.load %arg8[%c0_15, %c0_16] : memref<8x128xf32, #tpu.memory_space<vmem>>, vector<8x128xf32>
    tpu.vector_store %arg8[%c0_15, %c0_16], %15 {strides = array<i32>} : memref<8x128xf32, #tpu.memory_space<vmem>>, vector<8x128xf32>,
    return
  }
  func.func @transform_0(%arg0: i32) -> (i32, i32) {
    %c0_i32 = arith.constant 0 : i32
    %c0_i32_0 = arith.constant 0 : i32
    return %arg0, %c0_i32 : i32, i32
  }
  func.func @transform_1(%arg0: i32) -> (i32, i32) {
    %c0_i32 = arith.constant 0 : i32
    %c0_i32_0 = arith.constant 0 : i32
    %c0_i32_1 = arith.constant 0 : i32
    return %c0_i32, %c0_i32_0 : i32, i32
  }
  func.func @transform_2(%arg0: i32) -> (i32, i32) {
    %c0_i32 = arith.constant 0 : i32
    %c0_i32_0 = arith.constant 0 : i32
    %c0_i32_1 = arith.constant 0 : i32
    return %c0_i32, %c0_i32_0 : i32, i32
  }
  func.func @transform_3(%arg0: i32) -> (i32, i32) {
    %c0_i32 = arith.constant 0 : i32
    %c0_i32_0 = arith.constant 0 : i32
    %c0_i32_1 = arith.constant 0 : i32
    return %c0_i32, %c0_i32_0 : i32, i32
  }
  func.func @transform_4(%arg0: i32) -> (i32, i32) {
    %c0_i32 = arith.constant 0 : i32
    %c0_i32_0 = arith.constant 0 : i32
    %c0_i32_1 = arith.constant 0 : i32
    return %c0_i32, %c0_i32_0 : i32, i32
  }
  func.func @transform_5(%arg0: i32) -> (i32, i32) {
    %c0_i32 = arith.constant 0 : i32
    %c0_i32_0 = arith.constant 0 : i32
    %c0_i32_1 = arith.constant 0 : i32
    return %c0_i32, %c0_i32_0 : i32, i32
  }
  func.func @transform_6(%arg0: i32) -> (i32, i32) {
    %c0_i32 = arith.constant 0 : i32
    %c0_i32_0 = arith.constant 0 : i32
    %c0_i32_1 = arith.constant 0 : i32
    return %c0_i32, %c0_i32_0 : i32, i32
  }
  func.func @transform_7(%arg0: i32) -> (i32, i32) {
    %c0_i32 = arith.constant 0 : i32
    %c0_i32_0 = arith.constant 0 : i32
    return %arg0, %c0_i32 : i32, i32
  }
}

</mosaic_0001>

<bundles_post_ra>
// kernel: tpu_custom_call.1
= control target key start
LH: loop header
LB: loop body
LE: loop exit
PB: predicated region body
PF: predicated region fallthrough
CT: control target
= control target key end

     0   :  { %12 = vsyncpa [#allocation3], 0  ;;  %s438_s0 = inlined_call_operand.hbm [shape: f32[8,128], index: 0, kind: input, shape index: {}]   ;;  %s439_s1 = inlined_call_operand.hbm [shape: f32[128,128], index: 1, kind: input, shape index: {}]   ;;  %s440_s2 = inlined_call_operand.vmem [shape: f32[1,128], index: 2, kind: input, shape index: {}]   ;;  %s441_s3 = inlined_call_operand.hbm [shape: f32[128,128], index: 3, kind: input, shape index: {}]   ;;  %s442_s4 = inlined_call_operand.vmem [shape: f32[1,128], index: 4, kind: input, shape index: {}]   ;;  %s443_s5 = inlined_call_operand.hbm [shape: f32[128,128], index: 5, kind: input, shape index: {}]   ;;  %s444_s6 = inlined_call_operand.vmem [shape: f32[1,128], index: 6, kind: input, shape index: {}]   ;;  %s445_s7 = inlined_call_operand.hbm [shape: f32[8,128], index: 7, kind: output, shape index: {}]  }
   0x1   :  { %13 = vsyncpa [#allocation6], 0 }
   0x2   :  { %14 = vsyncpa [#allocation9], 0  ;;  %s31_s26 = sshll.u32 %s439_s1, 4  ;;  %s32_s26 = int_to_ptr.hbm [resolvable:$true] %s31_s26 }
   0x3   :  { %15 = vsyncpa [#allocation4], 0  ;;  %s367_s27 = smov [#allocation5]   ;;  %s21_s8 = sshll.u32 %s438_s0, 4  ;;  %s22_s8 = int_to_ptr.hbm [resolvable:$true] %s21_s8 }
   0x4   :  { %s33_s28 = sshll.u32 %s367_s27, 4  ;;  %s368_s9 = smov 128   ;;  %s34_s28 = int_to_ptr.vmem [resolvable:$true] %s33_s28 }
   0x5   :  { %s369_s10 = smov 8   ;;  %s370_s11 = smov [#allocation2]  }
   0x6   :  { %39 = dma.hbm_to_vmem [thread:$0]  %s32_s26, 2048, %s34_s28, [#allocation6], %s368_s9, %s368_s9, %s369_s10  }
   0x7   :  { %s23_s12 = sshll.u32 %s370_s11, 4  ;;  %s46_s15 = sshll.u32 %s441_s3, 4  ;;  %s24_s12 = int_to_ptr.vmem [resolvable:$true] %s23_s12  ;;  %s47_s15 = int_to_ptr.hbm [resolvable:$true] %s46_s15 }
   0x8   :  { %26 = dma.hbm_to_vmem [thread:$0]  %s22_s8, 128, %s24_s12, [#allocation3]  }
   0x9   :  { %s61_s17 = sshll.u32 %s443_s5, 4  ;;  %s371_s18 = smov [#allocation7]   ;;  %s62_s17 = int_to_ptr.hbm [resolvable:$true] %s61_s17 }
   0xa   :  { %s48_s19 = sshll.u32 %s371_s18, 4  ;;  %s372_s0 = smov [#allocation8]   ;;  %s49_s19 = int_to_ptr.vmem [resolvable:$true] %s48_s19 }
   0xb   :  { %54 = dma.hbm_to_vmem [thread:$0]  %s47_s15, 2048, %s49_s19, [#allocation6], %s368_s9, %s368_s9, %s369_s10  }
   0xc   :  { %s63_s20 = sshll.u32 %s372_s0, 4  ;;  %s64_s20 = int_to_ptr.vmem [resolvable:$true] %s63_s20 }
   0xd   :  { %69 = dma.hbm_to_vmem [thread:$0]  %s62_s17, 2048, %s64_s20, [#allocation9], %s368_s9, %s368_s9, %s369_s10  }
   0xe   :  { %359 = dma.done.wait [#allocation3], 128  }
   0xf   :  { %360 = vsyncadd [#allocation3], 4294967168 }
  0x10   :  { %361 = dma.done.wait [#allocation6], 4096  }
  0x11   :  { %362 = vsyncadd [#allocation6], 4294963200 }
  0x12   :  { %363 = dma.done.wait [#allocation9], 2048  }
  0x13   :  { %364 = vsyncadd [#allocation9], 4294965248  ;;  %v104_v0 = vld [vmem:[#allocation5 + $0x78] sm:$0xff]  ;;  %v103_v1 = vld [vmem:[#allocation5 + $0x70] sm:$0xff]  ;;  %s217_s28 = sshll.u32 %s445_s7, 4  ;;  %s218_s28 = int_to_ptr.hbm [resolvable:$true] %s217_s28 }
  0x14   :  { %109 = vmatpush.msra.mxu0 %v104_v0  ;;  %v102_v2 = vld [vmem:[#allocation5 + $0x68] sm:$0xff]  ;;  %v101_v3 = vld [vmem:[#allocation5 + $0x60] sm:$0xff]  ;;  %v144_v4 = vld [vmem:[#allocation7 + $0x78] sm:$0xff] }
  0x15   :  { %v100_v5 = vld [vmem:[#allocation5 + $0x58] sm:$0xff]  ;;  %149 = vmatpush.msra.mxu1 %v144_v4  ;;  %v143_v6 = vld [vmem:[#allocation7 + $0x70] sm:$0xff]  ;;  %v142_v7 = vld [vmem:[#allocation7 + $0x68] sm:$0xff] }
  0x16   :  { %110 = vmatpush.msra.mxu0 %v103_v1  ;;  %v99_v8 = vld [vmem:[#allocation5 + $0x50] sm:$0xff]  ;;  %v141_v9 = vld [vmem:[#allocation7 + $0x60] sm:$0xff]  ;;  %v98_v10 = vld [vmem:[#allocation5 + $0x48] sm:$0xff] }
  0x17   :  { %150 = vmatpush.msra.mxu1 %v143_v6  ;;  %v140_v11 = vld [vmem:[#allocation7 + $0x58] sm:$0xff]  ;;  %v97_v12 = vld [vmem:[#allocation5 + $0x40] sm:$0xff]  ;;  %v139_v13 = vld [vmem:[#allocation7 + $0x50] sm:$0xff] }
  0x18   :  { %111 = vmatpush.msra.mxu0 %v102_v2  ;;  %v96_v14 = vld [vmem:[#allocation5 + $0x38] sm:$0xff]  ;;  %v138_v15 = vld [vmem:[#allocation7 + $0x48] sm:$0xff]  ;;  %v95_v16 = vld [vmem:[#allocation5 + $0x30] sm:$0xff] }
  0x19   :  { %151 = vmatpush.msra.mxu1 %v142_v7  ;;  %v137_v17 = vld [vmem:[#allocation7 + $0x40] sm:$0xff]  ;;  %v94_v18 = vld [vmem:[#allocation5 + $0x28] sm:$0xff]  ;;  %v136_v19 = vld [vmem:[#allocation7 + $0x38] sm:$0xff] }
  0x1a   :  { %112 = vmatpush.msra.mxu0 %v101_v3  ;;  %v93_v20 = vld [vmem:[#allocation5 + $0x20] sm:$0xff]  ;;  %v135_v21 = vld [vmem:[#allocation7 + $0x30] sm:$0xff]  ;;  %v92_v22 = vld [vmem:[#allocation5 + $0x18] sm:$0xff] }
  0x1b   :  { %152 = vmatpush.msra.mxu1 %v141_v9  ;;  %v134_v23 = vld [vmem:[#allocation7 + $0x28] sm:$0xff]  ;;  %v91_v24 = vld [vmem:[#allocation5 + $0x10] sm:$0xff]  ;;  %v133_v25 = vld [vmem:[#allocation7 + $0x20] sm:$0xff] }
  0x1c   :  { %113 = vmatpush.msra.mxu0 %v100_v5  ;;  %v90_v26 = vld [vmem:[#allocation5 + $0x8] sm:$0xff]  ;;  %v132_v27 = vld [vmem:[#allocation7 + $0x18] sm:$0xff]  ;;  %v89_v28 = vld [vmem:[#allocation5] sm:$0xff] }
  0x1d   :  { %153 = vmatpush.msra.mxu1 %v140_v11  ;;  %v88_v29 = vld [vmem:[#allocation2] sm:$0xff]  ;;  %v131_v30 = vld [vmem:[#allocation7 + $0x10] sm:$0xff]  ;;  %v130_v31 = vld [vmem:[#allocation7 + $0x8] sm:$0xff] }
  0x1e   :  { %114 = vmatpush.msra.mxu0 %v99_v8  ;;  %v129_v32 = vld [vmem:[#allocation7] sm:$0xff]  ;;  %v184_v33 = vld [vmem:[#allocation8 + $0x78] sm:$0xff]  ;;  %v183_v34 = vld [vmem:[#allocation8 + $0x70] sm:$0xff] }
  0x1f   :  { %154 = vmatpush.msra.mxu1 %v139_v13  ;;  %189 = vmatpush.msra.mxu2 %v184_v33  ;;  %v182_v35 = vld [vmem:[#allocation8 + $0x68] sm:$0xff]  ;;  %v181_v36 = vld [vmem:[#allocation8 + $0x60] sm:$0xff]  ;;  %v180_v37 = vld [vmem:[#allocation8 + $0x58] sm:$0xff] }
  0x20   :  { %115 = vmatpush.msra.mxu0 %v98_v10  ;;  %v179_v38 = vld [vmem:[#allocation8 + $0x50] sm:$0xff]  ;;  %v178_v39 = vld [vmem:[#allocation8 + $0x48] sm:$0xff]  ;;  %v177_v40 = vld [vmem:[#allocation8 + $0x40] sm:$0xff] }
  0x21   :  { %155 = vmatpush.msra.mxu1 %v138_v15  ;;  %190 = vmatpush.msra.mxu2 %v183_v34  ;;  %v176_v41 = vld [vmem:[#allocation8 + $0x38] sm:$0xff]  ;;  %v175_v42 = vld [vmem:[#allocation8 + $0x30] sm:$0xff]  ;;  %v174_v43 = vld [vmem:[#allocation8 + $0x28] sm:$0xff] }
  0x22   :  { %116 = vmatpush.msra.mxu0 %v97_v12  ;;  %v173_v44 = vld [vmem:[#allocation8 + $0x20] sm:$0xff]  ;;  %v172_v45 = vld [vmem:[#allocation8 + $0x18] sm:$0xff]  ;;  %v171_v46 = vld [vmem:[#allocation8 + $0x10] sm:$0xff] }
  0x23   :  { %156 = vmatpush.msra.mxu1 %v137_v17  ;;  %191 = vmatpush.msra.mxu2 %v182_v35  ;;  %v236_v47 = vld [vmem:[%s440_s2] ss:$0 sm:$0xff]  ;;  %v170_v50 = vld [vmem:[#allocation8 + $0x8] sm:$0xff]  ;;  %v169_v51 = vld [vmem:[#allocation8] sm:$0xff]  ;;  %s373_s2 = smov [#allocation10]  }
  0x24   :  { %117 = vmatpush.msra.mxu0 %v96_v14  ;;  %v237_v52 = vld [vmem:[%s442_s4] ss:$0 sm:$0xff]  ;;  %s215_s25 = sshll.u32 %s373_s2, 4  ;;  %s216_s25 = int_to_ptr.vmem [resolvable:$true] %s215_s25 }
  0x25   :  { %157 = vmatpush.msra.mxu1 %v136_v19  ;;  %192 = vmatpush.msra.mxu2 %v181_v36  ;;  %v238_v55 = vld [vmem:[%s444_s6] ss:$0 sm:$0xff] }
  0x26   :  { %118 = vmatpush.msra.mxu0 %v95_v16 }
  0x27   :  { %158 = vmatpush.msra.mxu1 %v135_v21  ;;  %193 = vmatpush.msra.mxu2 %v180_v37 }
  0x28   :  { %119 = vmatpush.msra.mxu0 %v94_v18 }
  0x29   :  { %159 = vmatpush.msra.mxu1 %v134_v23  ;;  %194 = vmatpush.msra.mxu2 %v179_v38 }
  0x2a   :  { %120 = vmatpush.msra.mxu0 %v93_v20 }
  0x2b   :  { %160 = vmatpush.msra.mxu1 %v133_v25  ;;  %195 = vmatpush.msra.mxu2 %v178_v39 }
  0x2c   :  { %121 = vmatpush.msra.mxu0 %v92_v22 }
  0x2d   :  { %161 = vmatpush.msra.mxu1 %v132_v27  ;;  %196 = vmatpush.msra.mxu2 %v177_v40 }
  0x2e   :  { %122 = vmatpush.msra.mxu0 %v91_v24 }
  0x2f   :  { %162 = vmatpush.msra.mxu1 %v131_v30  ;;  %197 = vmatpush.msra.mxu2 %v176_v41 }
  0x30   :  { %123 = vmatpush.msra.mxu0 %v90_v26 }
  0x31   :  { %163 = vmatpush.msra.mxu1 %v130_v31  ;;  %198 = vmatpush.msra.mxu2 %v175_v42 }
  0x32   :  { %124 = vmatpush.msra.mxu0 %v89_v28 }
  0x33   :  { %125 = vmatmul.f32.vlgmr.msra.gmra.mxu0 %v88_v29  ;;  %164 = vmatpush.msra.mxu1 %v129_v32 }
  0x34   :  { %199 = vmatpush.msra.mxu2 %v174_v43 }
  0x36   :  { %200 = vmatpush.msra.mxu2 %v173_v44 }
  0x38   :  { %201 = vmatpush.msra.mxu2 %v172_v45 }
  0x3a   :  { %202 = vmatpush.msra.mxu2 %v171_v46 }
  0x3c   :  { %203 = vmatpush.msra.mxu2 %v170_v50 }
  0x3e   :  { %204 = vmatpush.msra.mxu2 %v169_v51 }
  0xb0   :  { %v126_v48 = vpop.f32.mrf.mxu0 }
  0xb1   :  { %v127_v49 = vadd.f32 %v236_v47, %v126_v48 }
  0xb3   :  { %165 = vmatmul.f32.vlgmr.msra.gmra.mxu1 %v127_v49 }
 0x130   :  { %v166_v53 = vpop.f32.mrf.mxu1 }
 0x131   :  { %v167_v54 = vadd.f32 %v237_v52, %v166_v53 }
 0x133   :  { %205 = vmatmul.f32.vlgmr.msra.gmra.mxu2 %v167_v54 }
 0x1b6   :  { %v206_v56 = vpop.f32.mrf.mxu2 }
 0x1b7   :  { %v207_v57 = vadd.f32 %v238_v55, %v206_v56 }
 0x1b9   :  { %209 = vst [vmem:[#allocation10] sm:$0xff] %v207_v57 }
 0x1ba   :  { %220 = dma.vmem_to_hbm [thread:$0]  %s216_s25, 128, %s218_s28, [#allocation4]  }
 0x1bb   :  { %365 = dma.done.wait [#allocation4], 128  }
 0x1bc   :  { %366 = vsyncadd [#allocation4], 4294967168 }
 0x1bd   :  { %225 = vsyncpa [#allocation3], 1 }
 0x1be   :  { %226 = vsyncpa [#allocation6], 1 }
 0x1bf   :  { %227 = vsyncpa [#allocation9], 1 }
 0x1c0   :  { %228 = vsyncpa [#allocation4], 1 }

</bundles_post_ra>
